<compile_context>
chip_gen: v7x
topology: tpu7x:2x2x1
jax: 0.10.0
libtpu: 0.0.40
codegen_flags: <defaults>
</compile_context>

<pallas_src>
import functools

import jax
import jax.numpy as jnp
from jax.experimental import pallas as pl
from jax.experimental.pallas import tpu as pltpu

LN_EPS = 1e-5


def _round_up(x, m):
    return ((x + m - 1) // m) * m


def cls_head_kernel(x_ref, gamma_ref, beta_ref, w_ref, b_ref, out_ref, acc_ref,
                    *, inv_n, n_total, tn, needs_n_mask):
    k = pl.program_id(1)

    @pl.when(k == 0)
    def _init():
        acc_ref[...] = jnp.zeros_like(acc_ref)

    x = x_ref[...]                                       # (TB, TN, E)
    if needs_n_mask:
        # x is NOT padded in HBM: out-of-range sequence rows of the edge block
        # are undefined, so zero them before the pooled sum (free VPU filler).
        row = jax.lax.broadcasted_iota(jnp.int32, (tn, 1), 0)
        valid = (row + k * tn) < n_total                 # (TN, 1)
        x = jnp.where(valid[None, :, :], x, jnp.zeros_like(x))

    # Accumulate the pooled SUM over this sequence tile in f32.
    acc_ref[...] += jnp.sum(x, axis=1, dtype=jnp.float32)

    @pl.when(k == pl.num_programs(1) - 1)
    def _finalize():
        # Scale by 1/N only in the epilogue so eps is applied at the same scale
        # as torch.nn.LayerNorm over the mean-pooled input.
        pooled = acc_ref[...] * inv_n                    # (TB, E) f32
        mu = jnp.mean(pooled, axis=-1, keepdims=True)    # (TB, 1)
        xc = pooled - mu
        var = jnp.mean(xc * xc, axis=-1, keepdims=True)  # biased, like nn.LayerNorm
        inv = jax.lax.rsqrt(var + LN_EPS)
        normed = xc * inv * gamma_ref[...] + beta_ref[...]   # (1,E) broadcasts
        logits = jnp.dot(normed.astype(w_ref.dtype), w_ref[...],
                         preferred_element_type=jnp.float32)  # (TB, C_pad)
        out_ref[...] = (logits + b_ref[...]).astype(out_ref.dtype)


def classification_head(x, gamma, beta, w, b, *, tb=None, tn=None):
    B, N, E = x.shape
    C = w.shape[1]
    x_bytes = jnp.dtype(x.dtype).itemsize
    w_bytes = jnp.dtype(w.dtype).itemsize
    C_pad = _round_up(C, 128)  # lane-dense output / full MXU columns

    # --- generation-aware VMEM budget (v5e/v6e: 128 MiB, v7x: 64 MiB phys) ---
    vmem_phys = None
    try:
        vmem_phys = getattr(pltpu.get_tpu_info(), "vmem_capacity_bytes", None)
    except Exception:
        vmem_phys = None
    if not vmem_phys:
        vmem_phys = 64 << 20          # conservative default (fits every gen)
    vmem_limit = int(max(32 << 20, min((vmem_phys * 3) // 4, 100 << 20)))

    # dtype-specific sublane packing for the streamed (sublane) N axis
    sub = max(8, 32 // x_bytes)       # 8 f32, 16 bf16, 32 int8/fp8

    # --- tile selection ---
    if tb is None:
        tb = min(_round_up(B, 8), 256)
        if B >= 16 and -(-B // tb) < 2:
            # >= 2 batch tiles so the "parallel" axis shards across 2 TCs (v7x)
            tb = _round_up(-(-B // 2), 8)

    if tn is None:
        # Non-x VMEM footprint estimate (params single-buffered, out double).
        fixed = (E * C_pad * w_bytes                                 # w
                 + 8 * (C_pad + 2 * _round_up(E, 128)) * 4           # b, gamma, beta
                 + 2 * tb * C_pad * 4                                # out (f32, x2)
                 + tb * _round_up(E, 128) * 4)                       # acc scratch
        reserve = 4 << 20                                            # compiler scratch
        x_budget = max(512 << 10, (vmem_limit - fixed - reserve) // 2)
        cand = (x_budget // max(1, tb * E * x_bytes)) // sub * sub
        tn = min(_round_up(N, sub), max(sub, cand))

    grid = (pl.cdiv(B, tb), pl.cdiv(N, tn))

    # --- pad only the tiny params (never the activation tensor) ---
    wp = jnp.pad(w, ((0, 0), (0, C_pad - C)))
    bp = jnp.pad(b, (0, C_pad - C)).reshape(1, C_pad)
    gp = gamma.reshape(1, E)
    betap = beta.reshape(1, E)

    cost = pl.CostEstimate(
        flops=2 * B * E * C + 10 * B * E,
        transcendentals=0,
        bytes_accessed=(B * N * E * x_bytes + E * C * w_bytes + B * C * 4),
    )

    kernel = functools.partial(
        cls_head_kernel, inv_n=1.0 / N, n_total=N, tn=tn,
        needs_n_mask=(N % tn != 0))

    def run(single_buffer_consts):
        pmode = {}
        if single_buffer_consts:
            # Constant-index-map operands: one VMEM buffer is enough.
            pmode = dict(pipeline_mode=pl.Buffered(1))
        return pl.pallas_call(
            kernel,
            out_shape=jax.ShapeDtypeStruct((B, C_pad), jnp.float32),
            grid_spec=pltpu.PrefetchScalarGridSpec(
                num_scalar_prefetch=0,
                grid=grid,
                in_specs=[
                    pl.BlockSpec((tb, tn, E), lambda i, k: (i, k, 0)),       # x
                    pl.BlockSpec((1, E), lambda i, k: (0, 0), **pmode),      # gamma
                    pl.BlockSpec((1, E), lambda i, k: (0, 0), **pmode),      # beta
                    pl.BlockSpec((E, C_pad), lambda i, k: (0, 0), **pmode),  # w
                    pl.BlockSpec((1, C_pad), lambda i, k: (0, 0), **pmode),  # b
                ],
                out_specs=pl.BlockSpec((tb, C_pad), lambda i, k: (i, 0)),
                scratch_shapes=[pltpu.VMEM((tb, E), jnp.float32)],
            ),
            compiler_params=pltpu.CompilerParams(
                dimension_semantics=("parallel", "arbitrary"),
                vmem_limit_bytes=vmem_limit),
            cost_estimate=cost,
        )(x, gp, betap, wp, bp)

    try:
        out = run(True)
    except Exception:
        # Fall back to default (double-buffered) param specs if Buffered(1)
        # is not supported by the installed Pallas version.
        out = run(False)

    return out[:, :C]


if __name__ == "__main__":
    B, N, E, C = 2, 8, 32, 16   # batch, seq, emb_size, n_classes (small synthetic)

    key = jax.random.PRNGKey(0)
    kx, kw, kb = jax.random.split(key, 3)

    x = jax.random.normal(kx, (B, N, E), dtype=jnp.float32)

    # Deterministic synthetic parameters:
    gamma = jnp.ones((E,), dtype=jnp.float32)                     # LayerNorm weight
    beta = jnp.zeros((E,), dtype=jnp.float32)                     # LayerNorm bias
    w = jax.random.normal(kw, (E, C), dtype=jnp.float32) * 0.02   # Linear weight (E, C)
    b = jax.random.normal(kb, (C,), dtype=jnp.float32) * 0.02     # Linear bias

    out = classification_head(x, gamma, beta, w, b)
    jax.block_until_ready(out)

    # Reference check in plain JAX (matches torch: mean-pool -> LayerNorm -> Linear)
    pooled = jnp.mean(x, axis=1)
    mu = jnp.mean(pooled, axis=-1, keepdims=True)
    var = jnp.mean((pooled - mu) ** 2, axis=-1, keepdims=True)
    ref = ((pooled - mu) * jax.lax.rsqrt(var + LN_EPS)) * gamma + beta
    ref = ref @ w + b
    assert out.shape == (B, C)
    assert jnp.allclose(out, ref, atol=1e-4, rtol=1e-4), "mismatch vs reference"

    print("KERNEL_OK")
</pallas_src>

<mosaic_0001>
module attributes {stable_mosaic.version = 11 : i64} {
  func.func @cls_head_kernel(%arg0: i32, %arg1: i32, %arg2: memref<8x8x32xf32, #tpu.memory_space<vmem>>, %arg3: memref<1x32xf32, #tpu.memory_space<vmem>>, %arg4: memref<1x32xf32, #tpu.memory_space<vmem>>, %arg5: memref<32x128xf32, #tpu.memory_space<vmem>>, %arg6: memref<1x128xf32, #tpu.memory_space<vmem>>, %arg7: memref<8x128xf32, #tpu.memory_space<vmem>>, %arg8: memref<8x32xf32, #tpu.memory_space<vmem>>) attributes {dimension_semantics = [#tpu.dimension_semantics<parallel>, #tpu.dimension_semantics<arbitrary>], iteration_bounds = array<i64: 1, 1>, scalar_prefetch = 0 : i64, scratch_operands = 1 : i64, tpu.core_type = #tpu.core_type<tc>, window_params = [{transform_indices = @transform_0, window_bounds = array<i64: 8, 8, 32>}, {pipeline_mode = #tpu.pipeline_mode<synchronous>, transform_indices = @transform_1, window_bounds = array<i64: 1, 32>}, {pipeline_mode = #tpu.pipeline_mode<synchronous>, transform_indices = @transform_2, window_bounds = array<i64: 1, 32>}, {pipeline_mode = #tpu.pipeline_mode<synchronous>, transform_indices = @transform_3, window_bounds = array<i64: 32, 128>}, {pipeline_mode = #tpu.pipeline_mode<synchronous>, transform_indices = @transform_4, window_bounds = array<i64: 1, 128>}, {transform_indices = @transform_5, window_bounds = array<i64: 8, 128>}]} {
    %c0_i32 = arith.constant 0 : i32
    %0 = arith.cmpi eq, %arg1, %c0_i32 : i32
    %1 = arith.extui %0 : i1 to i32
    %c0_i32_0 = arith.constant 0 : i32
    %2 = arith.cmpi ne, %1, %c0_i32_0 : i32
    scf.if %2 {
      %cst_9 = arith.constant 0.000000e+00 : f32
      %11 = vector.broadcast %cst_9 : f32 to vector<8x32xf32>
      %c0_10 = arith.constant 0 : index
      %c0_11 = arith.constant 0 : index
      %12 = vector.load %arg8[%c0_10, %c0_11] : memref<8x32xf32, #tpu.memory_space<vmem>>, vector<8x32xf32>
      tpu.vector_store %arg8[%c0_10, %c0_11], %11 {strides = array<i32>} : memref<8x32xf32, #tpu.memory_space<vmem>>, vector<8x32xf32>,
    } else {
    }
    %c0 = arith.constant 0 : index
    %c0_1 = arith.constant 0 : index
    %c0_2 = arith.constant 0 : index
    %3 = vector.load %arg2[%c0, %c0_1, %c0_2] : memref<8x8x32xf32, #tpu.memory_space<vmem>>, vector<8x8x32xf32>
    %c0_3 = arith.constant 0 : index
    %c0_4 = arith.constant 0 : index
    %4 = vector.load %arg8[%c0_3, %c0_4] : memref<8x32xf32, #tpu.memory_space<vmem>>, vector<8x32xf32>
    %cst = arith.constant dense<0.000000e+00> : vector<8x32xf32>
    %5 = vector.multi_reduction <add>, %3, %cst [1] : vector<8x8x32xf32> to vector<8x32xf32>
    %6 = arith.addf %4, %5 : vector<8x32xf32>
    %c0_5 = arith.constant 0 : index
    %c0_6 = arith.constant 0 : index
    %7 = vector.load %arg8[%c0_5, %c0_6] : memref<8x32xf32, #tpu.memory_space<vmem>>, vector<8x32xf32>
    tpu.vector_store %arg8[%c0_5, %c0_6], %6 {strides = array<i32>} : memref<8x32xf32, #tpu.memory_space<vmem>>, vector<8x32xf32>,
    %c0_i32_7 = arith.constant 0 : i32
    %8 = arith.cmpi eq, %arg1, %c0_i32_7 : i32
    %9 = arith.extui %8 : i1 to i32
    %c0_i32_8 = arith.constant 0 : i32
    %10 = arith.cmpi ne, %9, %c0_i32_8 : i32
    scf.if %10 {
      %c0_9 = arith.constant 0 : index
      %c0_10 = arith.constant 0 : index
      %11 = vector.load %arg8[%c0_9, %c0_10] : memref<8x32xf32, #tpu.memory_space<vmem>>, vector<8x32xf32>
      %cst_11 = arith.constant 1.250000e-01 : f32
      %12 = vector.broadcast %cst_11 : f32 to vector<8x32xf32>
      %13 = arith.mulf %11, %12 : vector<8x32xf32>
      %cst_12 = arith.constant dense<0.000000e+00> : vector<8xf32>
      %14 = vector.multi_reduction <add>, %13, %cst_12 [1] : vector<8x32xf32> to vector<8xf32>
      %15 = vector.shape_cast %14 : vector<8xf32> to vector<8x1xf32>
      %cst_13 = arith.constant 3.200000e+01 : f32
      %16 = vector.broadcast %cst_13 : f32 to vector<8x1xf32>
      %17 = arith.divf %15, %16 : vector<8x1xf32>
      %18 = vector.broadcast %17 : vector<8x1xf32> to vector<8x32xf32>
      %19 = arith.subf %13, %18 : vector<8x32xf32>
      %20 = arith.mulf %19, %19 : vector<8x32xf32>
      %cst_14 = arith.constant dense<0.000000e+00> : vector<8xf32>
      %21 = vector.multi_reduction <add>, %20, %cst_14 [1] : vector<8x32xf32> to vector<8xf32>
      %22 = vector.shape_cast %21 : vector<8xf32> to vector<8x1xf32>
      %cst_15 = arith.constant 3.200000e+01 : f32
      %23 = vector.broadcast %cst_15 : f32 to vector<8x1xf32>
      %24 = arith.divf %22, %23 : vector<8x1xf32>
      %cst_16 = arith.constant 9.99999974E-6 : f32
      %25 = vector.broadcast %cst_16 : f32 to vector<8x1xf32>
      %26 = arith.addf %24, %25 : vector<8x1xf32>
      %27 = math.rsqrt %26 : vector<8x1xf32>
      %28 = vector.broadcast %27 : vector<8x1xf32> to vector<8x32xf32>
      %29 = arith.mulf %19, %28 : vector<8x32xf32>
      %c0_17 = arith.constant 0 : index
      %c0_18 = arith.constant 0 : index
      %30 = vector.load %arg3[%c0_17, %c0_18] : memref<1x32xf32, #tpu.memory_space<vmem>>, vector<1x32xf32>
      %31 = vector.broadcast %30 : vector<1x32xf32> to vector<8x32xf32>
      %32 = arith.mulf %29, %31 : vector<8x32xf32>
      %c0_19 = arith.constant 0 : index
      %c0_20 = arith.constant 0 : index
      %33 = vector.load %arg4[%c0_19, %c0_20] : memref<1x32xf32, #tpu.memory_space<vmem>>, vector<1x32xf32>
      %34 = vector.broadcast %33 : vector<1x32xf32> to vector<8x32xf32>
      %35 = arith.addf %32, %34 : vector<8x32xf32>
      %c0_21 = arith.constant 0 : index
      %c0_22 = arith.constant 0 : index
      %36 = vector.load %arg5[%c0_21, %c0_22] : memref<32x128xf32, #tpu.memory_space<vmem>>, vector<32x128xf32>
      %cst_23 = arith.constant dense<0.000000e+00> : vector<8x128xf32>
      %37 = tpu.matmul %35, %36, %cst_23 {dimension_numbers = #tpu.dot_dimension_numbers<[1], [0], [0], [1], [0, 0, 1, 1], [], []>} : vector<8x32xf32>, vector<32x128xf32>, vector<8x128xf32> -> vector<8x128xf32>
      %c0_24 = arith.constant 0 : index
      %c0_25 = arith.constant 0 : index
      %38 = vector.load %arg6[%c0_24, %c0_25] : memref<1x128xf32, #tpu.memory_space<vmem>>, vector<1x128xf32>
      %39 = vector.broadcast %38 : vector<1x128xf32> to vector<8x128xf32>
      %40 = arith.addf %37, %39 : vector<8x128xf32>
      %c0_26 = arith.constant 0 : index
      %c0_27 = arith.constant 0 : index
      %41 = vector.load %arg7[%c0_26, %c0_27] : memref<8x128xf32, #tpu.memory_space<vmem>>, vector<8x128xf32>
      tpu.vector_store %arg7[%c0_26, %c0_27], %40 {strides = array<i32>} : memref<8x128xf32, #tpu.memory_space<vmem>>, vector<8x128xf32>,
    } else {
    }
    return
  }
  func.func @transform_0(%arg0: i32, %arg1: i32) -> (i32, i32, i32) {
    %c0_i32 = arith.constant 0 : i32
    %c0_i32_0 = arith.constant 0 : i32
    return %arg0, %arg1, %c0_i32 : i32, i32, i32
  }
  func.func @transform_1(%arg0: i32, %arg1: i32) -> (i32, i32) {
    %c0_i32 = arith.constant 0 : i32
    %c0_i32_0 = arith.constant 0 : i32
    %c0_i32_1 = arith.constant 0 : i32
    return %c0_i32, %c0_i32_0 : i32, i32
  }
  func.func @transform_2(%arg0: i32, %arg1: i32) -> (i32, i32) {
    %c0_i32 = arith.constant 0 : i32
    %c0_i32_0 = arith.constant 0 : i32
    %c0_i32_1 = arith.constant 0 : i32
    return %c0_i32, %c0_i32_0 : i32, i32
  }
  func.func @transform_3(%arg0: i32, %arg1: i32) -> (i32, i32) {
    %c0_i32 = arith.constant 0 : i32
    %c0_i32_0 = arith.constant 0 : i32
    %c0_i32_1 = arith.constant 0 : i32
    return %c0_i32, %c0_i32_0 : i32, i32
  }
  func.func @transform_4(%arg0: i32, %arg1: i32) -> (i32, i32) {
    %c0_i32 = arith.constant 0 : i32
    %c0_i32_0 = arith.constant 0 : i32
    %c0_i32_1 = arith.constant 0 : i32
    return %c0_i32, %c0_i32_0 : i32, i32
  }
  func.func @transform_5(%arg0: i32, %arg1: i32) -> (i32, i32) {
    %c0_i32 = arith.constant 0 : i32
    %c0_i32_0 = arith.constant 0 : i32
    return %arg0, %c0_i32 : i32, i32
  }
}

module attributes {stable_mosaic.version = 11 : i64} {
  func.func @cls_head_kernel(%arg0: i32, %arg1: i32, %arg2: memref<8x8x32xf32, #tpu.memory_space<vmem>>, %arg3: memref<1x32xf32, #tpu.memory_space<vmem>>, %arg4: memref<1x32xf32, #tpu.memory_space<vmem>>, %arg5: memref<32x128xf32, #tpu.memory_space<vmem>>, %arg6: memref<1x128xf32, #tpu.memory_space<vmem>>, %arg7: memref<8x128xf32, #tpu.memory_space<vmem>>, %arg8: memref<8x32xf32, #tpu.memory_space<vmem>>) attributes {dimension_semantics = [#tpu.dimension_semantics<parallel>, #tpu.dimension_semantics<arbitrary>], iteration_bounds = array<i64: 1, 1>, scalar_prefetch = 0 : i64, scratch_operands = 1 : i64, tpu.core_type = #tpu.core_type<tc>, window_params = [{transform_indices = @transform_0, window_bounds = array<i64: 8, 8, 32>}, {pipeline_mode = #tpu.pipeline_mode<synchronous>, transform_indices = @transform_1, window_bounds = array<i64: 1, 32>}, {pipeline_mode = #tpu.pipeline_mode<synchronous>, transform_indices = @transform_2, window_bounds = array<i64: 1, 32>}, {pipeline_mode = #tpu.pipeline_mode<synchronous>, transform_indices = @transform_3, window_bounds = array<i64: 32, 128>}, {pipeline_mode = #tpu.pipeline_mode<synchronous>, transform_indices = @transform_4, window_bounds = array<i64: 1, 128>}, {transform_indices = @transform_5, window_bounds = array<i64: 8, 128>}]} {
    %c0_i32 = arith.constant 0 : i32
    %0 = arith.cmpi eq, %arg1, %c0_i32 : i32
    %1 = arith.extui %0 : i1 to i32
    %c0_i32_0 = arith.constant 0 : i32
    %2 = arith.cmpi ne, %1, %c0_i32_0 : i32
    scf.if %2 {
      %cst_9 = arith.constant 0.000000e+00 : f32
      %11 = vector.broadcast %cst_9 : f32 to vector<8x32xf32>
      %c0_10 = arith.constant 0 : index
      %c0_11 = arith.constant 0 : index
      %12 = vector.load %arg8[%c0_10, %c0_11] : memref<8x32xf32, #tpu.memory_space<vmem>>, vector<8x32xf32>
      tpu.vector_store %arg8[%c0_10, %c0_11], %11 {strides = array<i32>} : memref<8x32xf32, #tpu.memory_space<vmem>>, vector<8x32xf32>,
    } else {
    }
    %c0 = arith.constant 0 : index
    %c0_1 = arith.constant 0 : index
    %c0_2 = arith.constant 0 : index
    %3 = vector.load %arg2[%c0, %c0_1, %c0_2] : memref<8x8x32xf32, #tpu.memory_space<vmem>>, vector<8x8x32xf32>
    %c0_3 = arith.constant 0 : index
    %c0_4 = arith.constant 0 : index
    %4 = vector.load %arg8[%c0_3, %c0_4] : memref<8x32xf32, #tpu.memory_space<vmem>>, vector<8x32xf32>
    %cst = arith.constant dense<0.000000e+00> : vector<8x32xf32>
    %5 = vector.multi_reduction <add>, %3, %cst [1] : vector<8x8x32xf32> to vector<8x32xf32>
    %6 = arith.addf %4, %5 : vector<8x32xf32>
    %c0_5 = arith.constant 0 : index
    %c0_6 = arith.constant 0 : index
    %7 = vector.load %arg8[%c0_5, %c0_6] : memref<8x32xf32, #tpu.memory_space<vmem>>, vector<8x32xf32>
    tpu.vector_store %arg8[%c0_5, %c0_6], %6 {strides = array<i32>} : memref<8x32xf32, #tpu.memory_space<vmem>>, vector<8x32xf32>,
    %c0_i32_7 = arith.constant 0 : i32
    %8 = arith.cmpi eq, %arg1, %c0_i32_7 : i32
    %9 = arith.extui %8 : i1 to i32
    %c0_i32_8 = arith.constant 0 : i32
    %10 = arith.cmpi ne, %9, %c0_i32_8 : i32
    scf.if %10 {
      %c0_9 = arith.constant 0 : index
      %c0_10 = arith.constant 0 : index
      %11 = vector.load %arg8[%c0_9, %c0_10] : memref<8x32xf32, #tpu.memory_space<vmem>>, vector<8x32xf32>
      %cst_11 = arith.constant 1.250000e-01 : f32
      %12 = vector.broadcast %cst_11 : f32 to vector<8x32xf32>
      %13 = arith.mulf %11, %12 : vector<8x32xf32>
      %cst_12 = arith.constant dense<0.000000e+00> : vector<8xf32>
      %14 = vector.multi_reduction <add>, %13, %cst_12 [1] : vector<8x32xf32> to vector<8xf32>
      %15 = vector.shape_cast %14 : vector<8xf32> to vector<8x1xf32>
      %cst_13 = arith.constant 3.200000e+01 : f32
      %16 = vector.broadcast %cst_13 : f32 to vector<8x1xf32>
      %17 = arith.divf %15, %16 : vector<8x1xf32>
      %18 = vector.broadcast %17 : vector<8x1xf32> to vector<8x32xf32>
      %19 = arith.subf %13, %18 : vector<8x32xf32>
      %20 = arith.mulf %19, %19 : vector<8x32xf32>
      %cst_14 = arith.constant dense<0.000000e+00> : vector<8xf32>
      %21 = vector.multi_reduction <add>, %20, %cst_14 [1] : vector<8x32xf32> to vector<8xf32>
      %22 = vector.shape_cast %21 : vector<8xf32> to vector<8x1xf32>
      %cst_15 = arith.constant 3.200000e+01 : f32
      %23 = vector.broadcast %cst_15 : f32 to vector<8x1xf32>
      %24 = arith.divf %22, %23 : vector<8x1xf32>
      %cst_16 = arith.constant 9.99999974E-6 : f32
      %25 = vector.broadcast %cst_16 : f32 to vector<8x1xf32>
      %26 = arith.addf %24, %25 : vector<8x1xf32>
      %27 = math.rsqrt %26 : vector<8x1xf32>
      %28 = vector.broadcast %27 : vector<8x1xf32> to vector<8x32xf32>
      %29 = arith.mulf %19, %28 : vector<8x32xf32>
      %c0_17 = arith.constant 0 : index
      %c0_18 = arith.constant 0 : index
      %30 = vector.load %arg3[%c0_17, %c0_18] : memref<1x32xf32, #tpu.memory_space<vmem>>, vector<1x32xf32>
      %31 = vector.broadcast %30 : vector<1x32xf32> to vector<8x32xf32>
      %32 = arith.mulf %29, %31 : vector<8x32xf32>
      %c0_19 = arith.constant 0 : index
      %c0_20 = arith.constant 0 : index
      %33 = vector.load %arg4[%c0_19, %c0_20] : memref<1x32xf32, #tpu.memory_space<vmem>>, vector<1x32xf32>
      %34 = vector.broadcast %33 : vector<1x32xf32> to vector<8x32xf32>
      %35 = arith.addf %32, %34 : vector<8x32xf32>
      %c0_21 = arith.constant 0 : index
      %c0_22 = arith.constant 0 : index
      %36 = vector.load %arg5[%c0_21, %c0_22] : memref<32x128xf32, #tpu.memory_space<vmem>>, vector<32x128xf32>
      %cst_23 = arith.constant dense<0.000000e+00> : vector<8x128xf32>
      %37 = tpu.matmul %35, %36, %cst_23 {dimension_numbers = #tpu.dot_dimension_numbers<[1], [0], [0], [1], [0, 0, 1, 1], [], []>} : vector<8x32xf32>, vector<32x128xf32>, vector<8x128xf32> -> vector<8x128xf32>
      %c0_24 = arith.constant 0 : index
      %c0_25 = arith.constant 0 : index
      %38 = vector.load %arg6[%c0_24, %c0_25] : memref<1x128xf32, #tpu.memory_space<vmem>>, vector<1x128xf32>
      %39 = vector.broadcast %38 : vector<1x128xf32> to vector<8x128xf32>
      %40 = arith.addf %37, %39 : vector<8x128xf32>
      %c0_26 = arith.constant 0 : index
      %c0_27 = arith.constant 0 : index
      %41 = vector.load %arg7[%c0_26, %c0_27] : memref<8x128xf32, #tpu.memory_space<vmem>>, vector<8x128xf32>
      tpu.vector_store %arg7[%c0_26, %c0_27], %40 {strides = array<i32>} : memref<8x128xf32, #tpu.memory_space<vmem>>, vector<8x128xf32>,
    } else {
    }
    return
  }
  func.func @transform_0(%arg0: i32, %arg1: i32) -> (i32, i32, i32) {
    %c0_i32 = arith.constant 0 : i32
    %c0_i32_0 = arith.constant 0 : i32
    return %arg0, %arg1, %c0_i32 : i32, i32, i32
  }
  func.func @transform_1(%arg0: i32, %arg1: i32) -> (i32, i32) {
    %c0_i32 = arith.constant 0 : i32
    %c0_i32_0 = arith.constant 0 : i32
    %c0_i32_1 = arith.constant 0 : i32
    return %c0_i32, %c0_i32_0 : i32, i32
  }
  func.func @transform_2(%arg0: i32, %arg1: i32) -> (i32, i32) {
    %c0_i32 = arith.constant 0 : i32
    %c0_i32_0 = arith.constant 0 : i32
    %c0_i32_1 = arith.constant 0 : i32
    return %c0_i32, %c0_i32_0 : i32, i32
  }
  func.func @transform_3(%arg0: i32, %arg1: i32) -> (i32, i32) {
    %c0_i32 = arith.constant 0 : i32
    %c0_i32_0 = arith.constant 0 : i32
    %c0_i32_1 = arith.constant 0 : i32
    return %c0_i32, %c0_i32_0 : i32, i32
  }
  func.func @transform_4(%arg0: i32, %arg1: i32) -> (i32, i32) {
    %c0_i32 = arith.constant 0 : i32
    %c0_i32_0 = arith.constant 0 : i32
    %c0_i32_1 = arith.constant 0 : i32
    return %c0_i32, %c0_i32_0 : i32, i32
  }
  func.func @transform_5(%arg0: i32, %arg1: i32) -> (i32, i32) {
    %c0_i32 = arith.constant 0 : i32
    %c0_i32_0 = arith.constant 0 : i32
    return %arg0, %c0_i32 : i32, i32
  }
}

</mosaic_0001>

<bundles_post_ra>
// kernel: tpu_custom_call.1
= control target key start
LH: loop header
LB: loop body
LE: loop exit
PB: predicated region body
PF: predicated region fallthrough
CT: control target
= control target key end

     0   :  { %10 = vsyncpa [#allocation4], 0  ;;  %s496_s0 = inlined_call_operand.hbm [shape: f32[2,8,32], index: 0, kind: input, shape index: {}]   ;;  %s497_s1 = inlined_call_operand.vmem [shape: f32[1,32], index: 1, kind: input, shape index: {}]   ;;  %s498_s2 = inlined_call_operand.vmem [shape: f32[1,32], index: 2, kind: input, shape index: {}]   ;;  %s499_s3 = inlined_call_operand.hbm [shape: f32[32,128], index: 3, kind: input, shape index: {}]   ;;  %s500_s4 = inlined_call_operand.vmem [shape: f32[1,128], index: 4, kind: input, shape index: {}]   ;;  %s501_s5 = inlined_call_operand.hbm [shape: f32[2,128], index: 5, kind: output, shape index: {}]  }
   0x1   :  { %11 = vsyncpa [#allocation7], 0 }
   0x2   :  { %12 = vsyncpa [#allocation5], 0 }
   0x3   :  { %17 = vsyncadd [#allocation4], 768  ;;  %s394_s18 = smov [#allocation3]   ;;  %s322_s22 = scalar_lea.hbm %s496_s0, 256 }
   0x4   :  { %s18_s19 = sshll.u32 %s394_s18, 4  ;;  %p323_p0 = scmp.ne.s32.totalorder %s496_s0, %s322_s22  ;;  %s19_s19 = int_to_ptr.vmem [resolvable:$true] %s18_s19 }
   0x5   :  { %p326_p1 = scmp.lt.u32.totalorder %s322_s22, %s496_s0 }
   0x7   :  { %p328_p2 = pnand %p326_p1, %p323_p0 }
   0x9   :  { %331 = shalt.err (!%p328_p2)
}
   0xa   :  { %s332_s27 = scalar_lea.vmem %s19_s19, 256  ;;  %s336_s28 = scalar_lea.vmem %s19_s19, 1024 }
   0xb   :  { %p333_p3 = scmp.ne.s32.totalorder %s19_s19, %s332_s27  ;;  %p337_p4 = scmp.lt.s32.totalorder %s19_s19, %s19_s19 }
   0xc   :  { %p338_p5 = scmp.lt.s32.totalorder %s336_s28, %s332_s27 }
   0xe   :  { %p339_p6 = por %p338_p5, %p337_p4 }
  0x10   :  { %p340_p7 = pnand %p339_p6, %p333_p3 }
  0x12   :  { %343 = shalt.err (!%p340_p7)
}
  0x13   :  { %s395_s29 = smov 128   ;;  %s396_s30 = smov 8  }
  0x14   :  { %24 = dma.hbm_to_vmem [thread:$0]  %s496_s0, 256, %s19_s19, [#allocation4], %s395_s29, %s395_s29, %s396_s30  }
  0x15   :  { %s397_s8 = smov [#allocation6]   ;;  %s344_s12 = scalar_lea.hbm %s499_s3, 512 }
  0x16   :  { %s34_s9 = sshll.u32 %s397_s8, 4  ;;  %p345_p8 = scmp.ne.s32.totalorder %s499_s3, %s344_s12  ;;  %s35_s9 = int_to_ptr.vmem [resolvable:$true] %s34_s9 }
  0x17   :  { %p348_p9 = scmp.lt.u32.totalorder %s344_s12, %s499_s3 }
  0x19   :  { %p350_p10 = pnand %p348_p9, %p345_p8 }
  0x1b   :  { %353 = shalt.err (!%p350_p10)
}
  0x1c   :  { %s354_s17 = scalar_lea.vmem %s35_s9, 512  ;;  %p359_p12 = scmp.lt.s32.totalorder %s35_s9, %s35_s9 }
  0x1d   :  { %p355_p11 = scmp.ne.s32.totalorder %s35_s9, %s354_s17  ;;  %p360_p13 = scmp.lt.s32.totalorder %s354_s17, %s354_s17 }
  0x1f   :  { %p361_p0 = por %p360_p13, %p359_p12 }
  0x21   :  { %p362_p1 = pnand %p361_p0, %p355_p11 }
  0x23   :  { %365 = shalt.err (!%p362_p1)
}
  0x24   :  { %40 = dma.hbm_to_vmem [thread:$0]  %s499_s3, 512, %s35_s9, [#allocation7], %s395_s29, %s395_s29, %s396_s30  }
  0x25   :  { %388 = dma.done.wait [#allocation4], 1024  }
  0x26   :  { %389 = vsyncadd [#allocation4], 4294966272 }
  0x27   :  { %390 = dma.done.wait [#allocation7], 512  }
  0x28   :  { %391 = vsyncadd [#allocation7], 4294966784  ;;  %vm53_vm0 = vcmask 261120   ;;  %v398_v0 = vmov 0.0   ;;  %v55_v1 = vld [vmem:[#allocation3] sm:$0xff]  ;;  %v56_v2 = vld [vmem:[#allocation3 + $0x8] sm:$0xff] }
  0x29   :  { %54 = vst.msk [vmem:[#allocation2] sm:$0xff] %vm53_vm0, %v398_v0  ;;  %v57_v3 = vld [vmem:[#allocation3 + $0x10] sm:$0xff]  ;;  %v58_v4 = vld [vmem:[#allocation3 + $0x18] sm:$0xff]  ;;  %v59_v5 = vld [vmem:[#allocation3 + $0x20] sm:$0xff]  ;;  %v65_v7 = vsel %vm53_vm0, %v55_v1, 0.0  ;;  %v72_v8 = vsel %vm53_vm0, %v56_v2, 0.0 }
  0x2a   :  { %v60_v6 = vld [vmem:[#allocation3 + $0x28] sm:$0xff]  ;;  %v79_v9 = vsel %vm53_vm0, %v57_v3, 0.0  ;;  %v61_v10 = vld [vmem:[#allocation3 + $0x30] sm:$0xff]  ;;  %v62_v11 = vld [vmem:[#allocation3 + $0x38] sm:$0xff]  ;;  %v66_v12 = vrot.slane %v65_v7, 4  ;;  %v73_v13 = vrot.slane %v72_v8, 4 }
  0x2b   :  { %v80_v14 = vrot.slane %v79_v9, 4  ;;  %v86_v15 = vsel %vm53_vm0, %v58_v4, 0.0  ;;  %v93_v16 = vsel %vm53_vm0, %v59_v5, 0.0  ;;  %v100_v17 = vsel %vm53_vm0, %v60_v6, 0.0 }
  0x2c   :  { %v107_v18 = vsel %vm53_vm0, %v61_v10, 0.0  ;;  %vm129_vm1 = vcmask 1041409   ;;  %v67_v19 = vadd.f32 %v66_v12, %v65_v7  ;;  %v74_v20 = vadd.f32 %v73_v13, %v72_v8 }
  0x2d   :  { %v81_v21 = vadd.f32 %v80_v14, %v79_v9  ;;  %v87_v22 = vrot.slane %v86_v15, 4  ;;  %v94_v23 = vrot.slane %v93_v16, 4  ;;  %v101_v24 = vrot.slane %v100_v17, 4 }
  0x2e   :  { %v108_v25 = vrot.slane %v107_v18, 4  ;;  %v114_v26 = vsel %vm53_vm0, %v62_v11, 0.0  ;;  %vm131_vm2 = vcmask 1042434   ;;  %v68_v27 = vrot.slane %v67_v19, 2 }
  0x2f   :  { %v75_v28 = vrot.slane %v74_v20, 2  ;;  %v82_v29 = vrot.slane %v81_v21, 2  ;;  %v88_v30 = vadd.f32 %v87_v22, %v86_v15  ;;  %v95_v31 = vadd.f32 %v94_v23, %v93_v16 }
  0x30   :  { %v102_v32 = vadd.f32 %v101_v24, %v100_v17  ;;  %v109_v33 = vadd.f32 %v108_v25, %v107_v18  ;;  %v115_v34 = vrot.slane %v114_v26, 4  ;;  %v69_v35 = vadd.f32 %v68_v27, %v67_v19  ;;  %v63_v6 = vld [vmem:[#allocation2] sm:$0xff]  ;;  %v181_v19 = vld [vmem:[#allocation6] sm:$0xff] }
  0x31   :  { %v76_v36 = vadd.f32 %v75_v28, %v74_v20  ;;  %v83_v37 = vadd.f32 %v82_v29, %v81_v21  ;;  %v89_v38 = vrot.slane %v88_v30, 2  ;;  %v96_v39 = vrot.slane %v95_v31, 2  ;;  %v182_v20 = vld [vmem:[#allocation6 + $0x8] sm:$0xff]  ;;  %v183_v21 = vld [vmem:[#allocation6 + $0x10] sm:$0xff]  ;;  %v184_v24 = vld [vmem:[#allocation6 + $0x18] sm:$0xff] }
  0x32   :  { %v103_v40 = vrot.slane %v102_v32, 2  ;;  %v110_v41 = vrot.slane %v109_v33, 2  ;;  %v116_v42 = vadd.f32 %v115_v34, %v114_v26  ;;  %v70_v43 = vrot.slane %v69_v35, 1  ;;  %v286_v34 = vld [vmem:[%s500_s4] ss:$0 sm:$0xff] }
  0x33   :  { %v77_v44 = vrot.slane %v76_v36, 1  ;;  %v84_v45 = vrot.slane %v83_v37, 1  ;;  %v90_v46 = vadd.f32 %v89_v38, %v88_v30  ;;  %v97_v47 = vadd.f32 %v96_v39, %v95_v31  ;;  %v284_v30 = vld [vmem:[%s497_s1] ss:$0 sm:$0xff] }
  0x34   :  { %v104_v48 = vadd.f32 %v103_v40, %v102_v32  ;;  %v111_v49 = vadd.f32 %v110_v41, %v109_v33  ;;  %v117_v50 = vrot.slane %v116_v42, 2  ;;  %v71_v51 = vadd.f32 %v70_v43, %v69_v35  ;;  %v285_v32 = vld [vmem:[%s498_s2] ss:$0 sm:$0xff] }
  0x35   :  { %v78_v52 = vadd.f32 %v77_v44, %v76_v36  ;;  %v85_v53 = vadd.f32 %v84_v45, %v83_v37  ;;  %v91_v54 = vrot.slane %v90_v46, 1  ;;  %v98_v55 = vrot.slane %v97_v47, 1 }
  0x36   :  { %v105_v56 = vrot.slane %v104_v48, 1  ;;  %v112_v57 = vrot.slane %v111_v49, 1  ;;  %v118_v58 = vadd.f32 %v117_v50, %v116_v42  ;;  %vm133_vm3 = vcmask 1043459  }
  0x37   :  { %v92_v59 = vadd.f32 %v91_v54, %v90_v46  ;;  %v130_v60 = vsel %vm129_vm1, %v78_v52, %v71_v51  ;;  %v99_v61 = vadd.f32 %v98_v55, %v97_v47  ;;  %vm135_vm4 = vcmask 1044484  }
  0x38   :  { %v106_v62 = vadd.f32 %v105_v56, %v104_v48  ;;  %v119_v63 = vrot.slane %v118_v58, 1  ;;  %v113_v1 = vadd.f32 %v112_v57, %v111_v49  ;;  %v132_v2 = vsel %vm131_vm2, %v85_v53, %v130_v60 }
  0x39   :  { %vm137_vm5 = vcmask 1045509   ;;  %v134_v4 = vsel %vm133_vm3, %v92_v59, %v132_v2  ;;  %vm139_vm6 = vcmask 1046534   ;;  %vm141_vm7 = vcmask 1047559  }
  0x3a   :  { %v120_v3 = vadd.f32 %v119_v63, %v118_v58  ;;  %v136_v5 = vsel %vm135_vm4, %v99_v61, %v134_v4  ;;  %v399_v22 = vmov 0.0|0.0   ;;  %v305_v23 = vpack.c.bf16 %v182_v20, %v181_v19 }
  0x3b   :  { %v138_v7 = vsel %vm137_vm5, %v106_v62, %v136_v5  ;;  %304 = vmatprep.subr.bf16.mxu0 %v399_v22  ;;  %vm400_vm8 = vmmov 0   ;;  %v308_v25 = vpack.c.bf16 %v184_v24, %v183_v21 }
  0x3c   :  { %v140_v8 = vsel %vm139_vm6, %v113_v1, %v138_v7  ;;  %301 = vmatprep.mubr.msk.f32.mxu0 %vm400_vm8, %v398_v0  ;;  %306 = vmatpush3.bf16.msra.mxu0 %v305_v23 }
  0x3d   :  { %v142_v9 = vsel %vm141_vm7, %v120_v3, %v140_v8  ;;  %307 = vmatprep.subr.bf16.mxu0 %v399_v22 }
  0x3e   :  { %v144_v10 = vadd.f32 %v142_v9, %v63_v6 }
  0x40   :  { %145 = vst.msk [vmem:[#allocation2] sm:$0xff] %vm53_vm0, %v144_v10  ;;  %309 = vmatpush3.bf16.msra.mxu0 %v308_v25 }
  0x47   :  { %v149_v11 = vld [vmem:[#allocation2] sm:$0xff] }
  0x48   :  { %v150_v12 = vmul.f32 0.125, %v149_v11 }
  0x4a   :  { %v151_v13 = vsel %vm53_vm0, %v150_v12, 0.0 }
  0x4b   :  { %152 = vadd.xlane.f32.xlu0 %v151_v13 }
  0xd8   :  { %v153_v14 = vpop.xlane.xlu0 %152 }
  0xd9   :  { %v155_v15 = vmul.f32 0.03125, %v153_v14 }
  0xdb   :  { %v156_v16 = vsub.f32 %v150_v12, %v155_v15 }
  0xdd   :  { %v157_v17 = vmul.f32 %v156_v16, %v156_v16 }
  0xdf   :  { %v158_v18 = vsel %vm53_vm0, %v157_v17, 0.0 }
  0xe0   :  { %159 = vadd.xlane.f32.xlu0 %v158_v18 }
 0x16d   :  { %v160_v26 = vpop.xlane.xlu0 %159 }
 0x16e   :  { %v161_v27 = vmul.f32 0.03125, %v160_v26 }
 0x170   :  { %v162_v28 = vadd.f32 1e-05, %v161_v27 }
 0x172   :  { %320 = vrsqrt.f32 %v162_v28 }
 0x17c   :  { %v321_v29 = vpop.eup %320 }
 0x17d   :  { %v164_v31 = vmul.f32 %v321_v29, %v156_v16 }
 0x17f   :  { %v172_v33 = vmul.f32 %v284_v30, %v164_v31 }
 0x181   :  { %v180_v0 = vadd.f32 %v285_v32, %v172_v33 }
 0x183   :  { %302 = vmatmul.mubr.msk.f32.vlgmr.msra.gmra.mrb[0].mxu0 %vm53_vm0, %v180_v0 }
 0x256   :  { %v261_v35 = vpop.f32.mrb[0].mxu0 }
 0x257   :  { %v262_v36 = vadd.f32 %v286_v34, %v261_v35  ;;  %v303_v37 = vpop.f32.mrb[1].mxu0 }
 0x259   :  { %265 = vst [vmem:[#allocation8] sm:$0xff] %v262_v36 }
 0x25a   :  { %270 = vsyncadd [#allocation5], 96  ;;  %s401_s24 = smov [#allocation8]  }
 0x25b   :  { %s271_s1 = sshll.u32 %s401_s24, 4  ;;  %s272_s1 = int_to_ptr.vmem [resolvable:$true] %s271_s1 }
 0x25c   :  { %s366_s25 = scalar_lea.vmem %s272_s1, 32  ;;  %s370_s26 = scalar_lea.vmem %s272_s1, 128 }
 0x25d   :  { %p367_p2 = scmp.ne.s32.totalorder %s272_s1, %s366_s25  ;;  %p371_p3 = scmp.lt.s32.totalorder %s272_s1, %s272_s1 }
 0x25e   :  { %p372_p4 = scmp.lt.s32.totalorder %s370_s26, %s366_s25 }
 0x260   :  { %p373_p5 = por %p372_p4, %p371_p3 }
 0x262   :  { %p374_p6 = pnand %p373_p5, %p367_p2 }
 0x264   :  { %377 = shalt.err (!%p374_p6)
}
 0x265   :  { %s378_s4 = scalar_lea.hbm %s501_s5, 32 }
 0x266   :  { %p379_p7 = scmp.ne.s32.totalorder %s501_s5, %s378_s4  ;;  %p382_p8 = scmp.lt.u32.totalorder %s378_s4, %s501_s5 }
 0x268   :  { %p384_p9 = pnand %p382_p8, %p379_p7 }
 0x26a   :  { %387 = shalt.err (!%p384_p9)
}
 0x26b   :  { %s402_s7 = smov 32   ;;  %s403_s8 = smov 2  }
 0x26c   :  { %277 = dma.vmem_to_hbm [thread:$0]  %s272_s1, 32, %s501_s5, [#allocation5], %s402_s7, %s402_s7, %s403_s8  }
 0x26d   :  { %392 = dma.done.wait [#allocation5], 128  }
 0x26e   :  { %393 = vsyncadd [#allocation5], 4294967168 }
 0x26f   :  { %281 = vsyncpa [#allocation4], 1 }
 0x270   :  { %282 = vsyncpa [#allocation7], 1 }
 0x271   :  { %283 = vsyncpa [#allocation5], 1 }

// kernel: tpu_custom_call.1
= control target key start
LH: loop header
LB: loop body
LE: loop exit
PB: predicated region body
PF: predicated region fallthrough
CT: control target
= control target key end

     0   :  { %10 = vsyncpa [#allocation4], 0  ;;  %s496_s0 = inlined_call_operand.hbm [shape: f32[2,8,32], index: 0, kind: input, shape index: {}]   ;;  %s497_s1 = inlined_call_operand.vmem [shape: f32[1,32], index: 1, kind: input, shape index: {}]   ;;  %s498_s2 = inlined_call_operand.vmem [shape: f32[1,32], index: 2, kind: input, shape index: {}]   ;;  %s499_s3 = inlined_call_operand.hbm [shape: f32[32,128], index: 3, kind: input, shape index: {}]   ;;  %s500_s4 = inlined_call_operand.vmem [shape: f32[1,128], index: 4, kind: input, shape index: {}]   ;;  %s501_s5 = inlined_call_operand.hbm [shape: f32[2,128], index: 5, kind: output, shape index: {}]  }
   0x1   :  { %11 = vsyncpa [#allocation7], 0 }
   0x2   :  { %12 = vsyncpa [#allocation5], 0 }
   0x3   :  { %17 = vsyncadd [#allocation4], 768  ;;  %s394_s18 = smov [#allocation3]   ;;  %s322_s22 = scalar_lea.hbm %s496_s0, 256 }
   0x4   :  { %s18_s19 = sshll.u32 %s394_s18, 4  ;;  %p323_p0 = scmp.ne.s32.totalorder %s496_s0, %s322_s22  ;;  %s19_s19 = int_to_ptr.vmem [resolvable:$true] %s18_s19 }
   0x5   :  { %p326_p1 = scmp.lt.u32.totalorder %s322_s22, %s496_s0 }
   0x7   :  { %p328_p2 = pnand %p326_p1, %p323_p0 }
   0x9   :  { %331 = shalt.err (!%p328_p2)
}
   0xa   :  { %s332_s27 = scalar_lea.vmem %s19_s19, 256  ;;  %s336_s28 = scalar_lea.vmem %s19_s19, 1024 }
   0xb   :  { %p333_p3 = scmp.ne.s32.totalorder %s19_s19, %s332_s27  ;;  %p337_p4 = scmp.lt.s32.totalorder %s19_s19, %s19_s19 }
   0xc   :  { %p338_p5 = scmp.lt.s32.totalorder %s336_s28, %s332_s27 }
   0xe   :  { %p339_p6 = por %p338_p5, %p337_p4 }
  0x10   :  { %p340_p7 = pnand %p339_p6, %p333_p3 }
  0x12   :  { %343 = shalt.err (!%p340_p7)
}
  0x13   :  { %s395_s29 = smov 128   ;;  %s396_s30 = smov 8  }
  0x14   :  { %24 = dma.hbm_to_vmem [thread:$0]  %s496_s0, 256, %s19_s19, [#allocation4], %s395_s29, %s395_s29, %s396_s30  }
  0x15   :  { %s397_s8 = smov [#allocation6]   ;;  %s344_s12 = scalar_lea.hbm %s499_s3, 512 }
  0x16   :  { %s34_s9 = sshll.u32 %s397_s8, 4  ;;  %p345_p8 = scmp.ne.s32.totalorder %s499_s3, %s344_s12  ;;  %s35_s9 = int_to_ptr.vmem [resolvable:$true] %s34_s9 }
  0x17   :  { %p348_p9 = scmp.lt.u32.totalorder %s344_s12, %s499_s3 }
  0x19   :  { %p350_p10 = pnand %p348_p9, %p345_p8 }
  0x1b   :  { %353 = shalt.err (!%p350_p10)
}
  0x1c   :  { %s354_s17 = scalar_lea.vmem %s35_s9, 512  ;;  %p359_p12 = scmp.lt.s32.totalorder %s35_s9, %s35_s9 }
  0x1d   :  { %p355_p11 = scmp.ne.s32.totalorder %s35_s9, %s354_s17  ;;  %p360_p13 = scmp.lt.s32.totalorder %s354_s17, %s354_s17 }
  0x1f   :  { %p361_p0 = por %p360_p13, %p359_p12 }
  0x21   :  { %p362_p1 = pnand %p361_p0, %p355_p11 }
  0x23   :  { %365 = shalt.err (!%p362_p1)
}
  0x24   :  { %40 = dma.hbm_to_vmem [thread:$0]  %s499_s3, 512, %s35_s9, [#allocation7], %s395_s29, %s395_s29, %s396_s30  }
  0x25   :  { %388 = dma.done.wait [#allocation4], 1024  }
  0x26   :  { %389 = vsyncadd [#allocation4], 4294966272 }
  0x27   :  { %390 = dma.done.wait [#allocation7], 512  }
  0x28   :  { %391 = vsyncadd [#allocation7], 4294966784  ;;  %vm53_vm0 = vcmask 261120   ;;  %v398_v0 = vmov 0.0   ;;  %v55_v1 = vld [vmem:[#allocation3] sm:$0xff]  ;;  %v56_v2 = vld [vmem:[#allocation3 + $0x8] sm:$0xff] }
  0x29   :  { %54 = vst.msk [vmem:[#allocation2] sm:$0xff] %vm53_vm0, %v398_v0  ;;  %v57_v3 = vld [vmem:[#allocation3 + $0x10] sm:$0xff]  ;;  %v58_v4 = vld [vmem:[#allocation3 + $0x18] sm:$0xff]  ;;  %v59_v5 = vld [vmem:[#allocation3 + $0x20] sm:$0xff]  ;;  %v65_v7 = vsel %vm53_vm0, %v55_v1, 0.0  ;;  %v72_v8 = vsel %vm53_vm0, %v56_v2, 0.0 }
  0x2a   :  { %v60_v6 = vld [vmem:[#allocation3 + $0x28] sm:$0xff]  ;;  %v79_v9 = vsel %vm53_vm0, %v57_v3, 0.0  ;;  %v61_v10 = vld [vmem:[#allocation3 + $0x30] sm:$0xff]  ;;  %v62_v11 = vld [vmem:[#allocation3 + $0x38] sm:$0xff]  ;;  %v66_v12 = vrot.slane %v65_v7, 4  ;;  %v73_v13 = vrot.slane %v72_v8, 4 }
  0x2b   :  { %v80_v14 = vrot.slane %v79_v9, 4  ;;  %v86_v15 = vsel %vm53_vm0, %v58_v4, 0.0  ;;  %v93_v16 = vsel %vm53_vm0, %v59_v5, 0.0  ;;  %v100_v17 = vsel %vm53_vm0, %v60_v6, 0.0 }
  0x2c   :  { %v107_v18 = vsel %vm53_vm0, %v61_v10, 0.0  ;;  %vm129_vm1 = vcmask 1041409   ;;  %v67_v19 = vadd.f32 %v66_v12, %v65_v7  ;;  %v74_v20 = vadd.f32 %v73_v13, %v72_v8 }
  0x2d   :  { %v81_v21 = vadd.f32 %v80_v14, %v79_v9  ;;  %v87_v22 = vrot.slane %v86_v15, 4  ;;  %v94_v23 = vrot.slane %v93_v16, 4  ;;  %v101_v24 = vrot.slane %v100_v17, 4 }
  0x2e   :  { %v108_v25 = vrot.slane %v107_v18, 4  ;;  %v114_v26 = vsel %vm53_vm0, %v62_v11, 0.0  ;;  %vm131_vm2 = vcmask 1042434   ;;  %v68_v27 = vrot.slane %v67_v19, 2 }
  0x2f   :  { %v75_v28 = vrot.slane %v74_v20, 2  ;;  %v82_v29 = vrot.slane %v81_v21, 2  ;;  %v88_v30 = vadd.f32 %v87_v22, %v86_v15  ;;  %v95_v31 = vadd.f32 %v94_v23, %v93_v16 }
  0x30   :  { %v102_v32 = vadd.f32 %v101_v24, %v100_v17  ;;  %v109_v33 = vadd.f32 %v108_v25, %v107_v18  ;;  %v115_v34 = vrot.slane %v114_v26, 4  ;;  %v69_v35 = vadd.f32 %v68_v27, %v67_v19  ;;  %v63_v6 = vld [vmem:[#allocation2] sm:$0xff]  ;;  %v181_v19 = vld [vmem:[#allocation6] sm:$0xff] }
  0x31   :  { %v76_v36 = vadd.f32 %v75_v28, %v74_v20  ;;  %v83_v37 = vadd.f32 %v82_v29, %v81_v21  ;;  %v89_v38 = vrot.slane %v88_v30, 2  ;;  %v96_v39 = vrot.slane %v95_v31, 2  ;;  %v182_v20 = vld [vmem:[#allocation6 + $0x8] sm:$0xff]  ;;  %v183_v21 = vld [vmem:[#allocation6 + $0x10] sm:$0xff]  ;;  %v184_v24 = vld [vmem:[#allocation6 + $0x18] sm:$0xff] }
  0x32   :  { %v103_v40 = vrot.slane %v102_v32, 2  ;;  %v110_v41 = vrot.slane %v109_v33, 2  ;;  %v116_v42 = vadd.f32 %v115_v34, %v114_v26  ;;  %v70_v43 = vrot.slane %v69_v35, 1  ;;  %v286_v34 = vld [vmem:[%s500_s4] ss:$0 sm:$0xff] }
  0x33   :  { %v77_v44 = vrot.slane %v76_v36, 1  ;;  %v84_v45 = vrot.slane %v83_v37, 1  ;;  %v90_v46 = vadd.f32 %v89_v38, %v88_v30  ;;  %v97_v47 = vadd.f32 %v96_v39, %v95_v31  ;;  %v284_v30 = vld [vmem:[%s497_s1] ss:$0 sm:$0xff] }
  0x34   :  { %v104_v48 = vadd.f32 %v103_v40, %v102_v32  ;;  %v111_v49 = vadd.f32 %v110_v41, %v109_v33  ;;  %v117_v50 = vrot.slane %v116_v42, 2  ;;  %v71_v51 = vadd.f32 %v70_v43, %v69_v35  ;;  %v285_v32 = vld [vmem:[%s498_s2] ss:$0 sm:$0xff] }
  0x35   :  { %v78_v52 = vadd.f32 %v77_v44, %v76_v36  ;;  %v85_v53 = vadd.f32 %v84_v45, %v83_v37  ;;  %v91_v54 = vrot.slane %v90_v46, 1  ;;  %v98_v55 = vrot.slane %v97_v47, 1 }
  0x36   :  { %v105_v56 = vrot.slane %v104_v48, 1  ;;  %v112_v57 = vrot.slane %v111_v49, 1  ;;  %v118_v58 = vadd.f32 %v117_v50, %v116_v42  ;;  %vm133_vm3 = vcmask 1043459  }
  0x37   :  { %v92_v59 = vadd.f32 %v91_v54, %v90_v46  ;;  %v130_v60 = vsel %vm129_vm1, %v78_v52, %v71_v51  ;;  %v99_v61 = vadd.f32 %v98_v55, %v97_v47  ;;  %vm135_vm4 = vcmask 1044484  }
  0x38   :  { %v106_v62 = vadd.f32 %v105_v56, %v104_v48  ;;  %v119_v63 = vrot.slane %v118_v58, 1  ;;  %v113_v1 = vadd.f32 %v112_v57, %v111_v49  ;;  %v132_v2 = vsel %vm131_vm2, %v85_v53, %v130_v60 }
  0x39   :  { %vm137_vm5 = vcmask 1045509   ;;  %v134_v4 = vsel %vm133_vm3, %v92_v59, %v132_v2  ;;  %vm139_vm6 = vcmask 1046534   ;;  %vm141_vm7 = vcmask 1047559  }
  0x3a   :  { %v120_v3 = vadd.f32 %v119_v63, %v118_v58  ;;  %v136_v5 = vsel %vm135_vm4, %v99_v61, %v134_v4  ;;  %v399_v22 = vmov 0.0|0.0   ;;  %v305_v23 = vpack.c.bf16 %v182_v20, %v181_v19 }
  0x3b   :  { %v138_v7 = vsel %vm137_vm5, %v106_v62, %v136_v5  ;;  %304 = vmatprep.subr.bf16.mxu0 %v399_v22  ;;  %vm400_vm8 = vmmov 0   ;;  %v308_v25 = vpack.c.bf16 %v184_v24, %v183_v21 }
  0x3c   :  { %v140_v8 = vsel %vm139_vm6, %v113_v1, %v138_v7  ;;  %301 = vmatprep.mubr.msk.f32.mxu0 %vm400_vm8, %v398_v0  ;;  %306 = vmatpush3.bf16.msra.mxu0 %v305_v23 }
  0x3d   :  { %v142_v9 = vsel %vm141_vm7, %v120_v3, %v140_v8  ;;  %307 = vmatprep.subr.bf16.mxu0 %v399_v22 }
  0x3e   :  { %v144_v10 = vadd.f32 %v142_v9, %v63_v6 }
  0x40   :  { %145 = vst.msk [vmem:[#allocation2] sm:$0xff] %vm53_vm0, %v144_v10  ;;  %309 = vmatpush3.bf16.msra.mxu0 %v308_v25 }
  0x47   :  { %v149_v11 = vld [vmem:[#allocation2] sm:$0xff] }
  0x48   :  { %v150_v12 = vmul.f32 0.125, %v149_v11 }
  0x4a   :  { %v151_v13 = vsel %vm53_vm0, %v150_v12, 0.0 }
  0x4b   :  { %152 = vadd.xlane.f32.xlu0 %v151_v13 }
  0xd8   :  { %v153_v14 = vpop.xlane.xlu0 %152 }
  0xd9   :  { %v155_v15 = vmul.f32 0.03125, %v153_v14 }
  0xdb   :  { %v156_v16 = vsub.f32 %v150_v12, %v155_v15 }
  0xdd   :  { %v157_v17 = vmul.f32 %v156_v16, %v156_v16 }
  0xdf   :  { %v158_v18 = vsel %vm53_vm0, %v157_v17, 0.0 }
  0xe0   :  { %159 = vadd.xlane.f32.xlu0 %v158_v18 }
 0x16d   :  { %v160_v26 = vpop.xlane.xlu0 %159 }
 0x16e   :  { %v161_v27 = vmul.f32 0.03125, %v160_v26 }
 0x170   :  { %v162_v28 = vadd.f32 1e-05, %v161_v27 }
 0x172   :  { %320 = vrsqrt.f32 %v162_v28 }
 0x17c   :  { %v321_v29 = vpop.eup %320 }
 0x17d   :  { %v164_v31 = vmul.f32 %v321_v29, %v156_v16 }
 0x17f   :  { %v172_v33 = vmul.f32 %v284_v30, %v164_v31 }
 0x181   :  { %v180_v0 = vadd.f32 %v285_v32, %v172_v33 }
 0x183   :  { %302 = vmatmul.mubr.msk.f32.vlgmr.msra.gmra.mrb[0].mxu0 %vm53_vm0, %v180_v0 }
 0x256   :  { %v261_v35 = vpop.f32.mrb[0].mxu0 }
 0x257   :  { %v262_v36 = vadd.f32 %v286_v34, %v261_v35  ;;  %v303_v37 = vpop.f32.mrb[1].mxu0 }
 0x259   :  { %265 = vst [vmem:[#allocation8] sm:$0xff] %v262_v36 }
 0x25a   :  { %270 = vsyncadd [#allocation5], 96  ;;  %s401_s24 = smov [#allocation8]  }
 0x25b   :  { %s271_s1 = sshll.u32 %s401_s24, 4  ;;  %s272_s1 = int_to_ptr.vmem [resolvable:$true] %s271_s1 }
 0x25c   :  { %s366_s25 = scalar_lea.vmem %s272_s1, 32  ;;  %s370_s26 = scalar_lea.vmem %s272_s1, 128 }
 0x25d   :  { %p367_p2 = scmp.ne.s32.totalorder %s272_s1, %s366_s25  ;;  %p371_p3 = scmp.lt.s32.totalorder %s272_s1, %s272_s1 }
 0x25e   :  { %p372_p4 = scmp.lt.s32.totalorder %s370_s26, %s366_s25 }
 0x260   :  { %p373_p5 = por %p372_p4, %p371_p3 }
 0x262   :  { %p374_p6 = pnand %p373_p5, %p367_p2 }
 0x264   :  { %377 = shalt.err (!%p374_p6)
}
 0x265   :  { %s378_s4 = scalar_lea.hbm %s501_s5, 32 }
 0x266   :  { %p379_p7 = scmp.ne.s32.totalorder %s501_s5, %s378_s4  ;;  %p382_p8 = scmp.lt.u32.totalorder %s378_s4, %s501_s5 }
 0x268   :  { %p384_p9 = pnand %p382_p8, %p379_p7 }
 0x26a   :  { %387 = shalt.err (!%p384_p9)
}
 0x26b   :  { %s402_s7 = smov 32   ;;  %s403_s8 = smov 2  }
 0x26c   :  { %277 = dma.vmem_to_hbm [thread:$0]  %s272_s1, 32, %s501_s5, [#allocation5], %s402_s7, %s402_s7, %s403_s8  }
 0x26d   :  { %392 = dma.done.wait [#allocation5], 128  }
 0x26e   :  { %393 = vsyncadd [#allocation5], 4294967168 }
 0x26f   :  { %281 = vsyncpa [#allocation4], 1 }
 0x270   :  { %282 = vsyncpa [#allocation7], 1 }
 0x271   :  { %283 = vsyncpa [#allocation5], 1 }

</bundles_post_ra>
